<compile_context>
chip_gen: v7x
topology: tpu7x:2x2x1
jax: 0.10.0
libtpu: 0.0.40
codegen_flags: <defaults>
</compile_context>

<pallas_src>
import jax
import jax.numpy as jnp
from jax import lax
from jax.experimental import pallas as pl
from jax.experimental.pallas import tpu as pltpu


# ----------------------------------------------------------------------------
# Static geometry helpers
# ----------------------------------------------------------------------------

def _geometry(H, W):
    OH1, OW1 = H - 2, W - 2              # conv1 valid output
    PH, PW = OH1 // 2, OW1 // 2          # maxpool(2,2) floor (PyTorch default)
    HP, WP = PH + 1, PW + 1              # phase-plane size / flattened width
    Rp = (PH - 1) * WP + PW              # pooled rows computed (flattened)
    R2 = (PH - 3) * WP + (PW - 2)        # conv2 rows computed
    R3 = (PH - 5) * WP + (PW - 4)        # conv3 rows computed
    OH3, OW3 = PH - 4, PW - 4            # final valid map size
    return PH, PW, HP, WP, Rp, R2, R3, OH3, OW3


def _vmem_limit_bytes(cin, c1, c2, c3, S, Rp, R2, R3):
    """Rough per-image working-set estimate (padded/buffered) with headroom."""
    bf, f4 = 2, 4
    est = 2 * (4 * cin * S * bf)                        # double-buffered input block
    est += 16 * cin * Rp * bf + 4 * 9 * cin * Rp * bf   # conv1 slices + tap concats
    est += 4 * c1 * Rp * f4 + c1 * Rp * (f4 + bf)       # phase outputs + pooled act
    est += 9 * c1 * R2 * bf + c2 * R2 * (f4 + bf)       # conv2 taps + act
    est += 9 * c2 * R3 * bf + c3 * R3 * (f4 + bf)       # conv3 taps + act
    est += 3 * 8 * R3 * f4                              # head + double-buffered out
    return int(min(max(4 * est, 8 * 2 ** 20), 100 * 2 ** 20))


# ----------------------------------------------------------------------------
# Fused kernel
# ----------------------------------------------------------------------------

def _make_pnet_kernel(WP, Rp, R2, R3, n_plane, alphas):
    a1, a2, a3 = alphas                  # nn.PReLU() = one scalar slope per layer

    # Junk-column invariant: the largest tap offset of each layer plus its row
    # count lands exactly at the end of the previous layer's buffer, and valid
    # outputs (col < valid width) never index the single junk column per row.
    assert 1 * WP + 1 + Rp == n_plane
    assert 2 * WP + 2 + R2 == Rp
    assert 2 * WP + 2 + R3 == R2

    def taps9(act_bf, n_out):
        """(C, L) bf16 on a width-WP flat grid -> (9*C, n_out) tap matrix."""
        return jnp.concatenate(
            [act_bf[:, kh * WP + kw: kh * WP + kw + n_out]
             for kh in range(3) for kw in range(3)], axis=0)

    def kernel(x_ref, w1_ref, b1_ref, w2_ref, b2_ref, w3_ref, b3_ref,
               wh_ref, bh_ref, out_ref):
        x = x_ref[0]                                    # (4, Cin, HP*WP) bf16

        # 16 distinct (phase-plane, shift) slices feed the 4 conv1 phase outputs.
        sl = {}
        for p in range(2):
            for q in range(2):
                for sh in range(2):
                    for sw in range(2):
                        off = sh * WP + sw
                        sl[(p, q, sh, sw)] = x[2 * p + q, :, off:off + Rp]

        def conv1_phase(dr, dc):
            t = jnp.concatenate(
                [sl[((dr + kh) % 2, (dc + kw) % 2,
                     (dr + kh) // 2, (dc + kw) // 2)]
                 for kh in range(3) for kw in range(3)], axis=0)   # (9*Cin, Rp)
            return jnp.dot(w1_ref[...], t, preferred_element_type=jnp.float32)

        # conv1 evaluated on the four 2x2 pool phases -> maxpool is an
        # elementwise max of the four phase outputs.  Bias is added after the
        # max (equivalent, since it is constant per channel within the window).
        v = jnp.maximum(jnp.maximum(conv1_phase(0, 0), conv1_phase(0, 1)),
                        jnp.maximum(conv1_phase(1, 0), conv1_phase(1, 1)))
        v = v + b1_ref[...]
        act1 = jnp.where(v > 0, v, a1 * v).astype(jnp.bfloat16)     # (c1, Rp)

        # conv2 + PReLU: one matmul, K = 9*c1 = 90.
        y2 = jnp.dot(w2_ref[...], taps9(act1, R2),
                     preferred_element_type=jnp.float32) + b2_ref[...]
        act2 = jnp.where(y2 > 0, y2, a2 * y2).astype(jnp.bfloat16)  # (c2, R2)

        # conv3 + PReLU: one matmul, K = 9*c2 = 144.
        # TODO(synk): on v5e (128-wide MXU K) split this dot into 2 x 72.
        y3 = jnp.dot(w3_ref[...], taps9(act2, R3),
                     preferred_element_type=jnp.float32) + b3_ref[...]
        act3 = jnp.where(y3 > 0, y3, a3 * y3).astype(jnp.bfloat16)  # (c3, R3)

        # Fused 1x1 heads, lane-dense (8, R3) store; sigmoid only on row 0.
        h = jnp.dot(wh_ref[...], act3,
                    preferred_element_type=jnp.float32) + bh_ref[...]
        row = lax.broadcasted_iota(jnp.int32, h.shape, 0)
        sig = pl.reciprocal(1.0 + jnp.exp(-h), approx=True)
        out_ref[0] = jnp.where(row == 0, sig, h)                    # (8, R3)

    return kernel


# ----------------------------------------------------------------------------
# Forward pass (NCHW in, NCHW out, like the PyTorch module)
# ----------------------------------------------------------------------------

def pnet_forward(params, x_nchw, alphas=(0.25, 0.25, 0.25)):
    N, cin, H, W = x_nchw.shape
    assert cin == params["conv1_w"].shape[1]
    PH, PW, HP, WP, Rp, R2, R3, OH3, OW3 = _geometry(H, W)
    assert OH3 >= 1 and OW3 >= 1, "input too small for PNet"

    c1 = params["conv1_w"].shape[0]
    c2 = params["conv2_w"].shape[0]
    c3 = params["conv3_w"].shape[0]
    S = HP * WP

    # Space-to-depth(2): the four (row, col)-parity phases of the input,
    # extracted with plain XLA strided slices outside the kernel.
    phases = [x_nchw[:, :, p:p + 2 * HP:2, q:q + 2 * WP:2]      # (N, Cin, HP, WP)
              for p in range(2) for q in range(2)]
    xph = jnp.stack(phases, axis=1).reshape(N, 4, cin, S).astype(jnp.bfloat16)

    # Conv weights in (Cout, 9*Cin) layout matching the (kh, kw)-ordered taps.
    def wmat(w):
        co, ci, kh, kw = w.shape
        return jnp.transpose(w, (0, 2, 3, 1)).reshape(co, kh * kw * ci)

    w1 = wmat(params["conv1_w"]).astype(jnp.bfloat16)            # (10, 27)
    w2 = wmat(params["conv2_w"]).astype(jnp.bfloat16)            # (16, 90)
    w3 = wmat(params["conv3_w"]).astype(jnp.bfloat16)            # (32, 144)
    b1 = params["conv1_b"].reshape(c1, 1).astype(jnp.float32)
    b2 = params["conv2_b"].reshape(c2, 1).astype(jnp.float32)
    b3 = params["conv3_b"].reshape(c3, 1).astype(jnp.float32)

    # Fused 1x1 heads: row 0 = cls, rows 1..4 = reg, rows 5..7 = zero pad.
    wh = jnp.concatenate([params["cls_w"].reshape(1, c3),
                          params["reg_w"].reshape(4, c3),
                          jnp.zeros((3, c3), jnp.float32)], axis=0)
    wh = wh.astype(jnp.bfloat16)                                 # (8, 32)
    bh = jnp.concatenate([params["cls_b"], params["reg_b"],
                          jnp.zeros((3,), jnp.float32)]).reshape(8, 1)

    kernel = _make_pnet_kernel(WP, Rp, R2, R3, S, alphas)
    vmem_limit = _vmem_limit_bytes(cin, c1, c2, c3, S, Rp, R2, R3)

    out_full = pl.pallas_call(
        kernel,
        out_shape=jax.ShapeDtypeStruct((N, 8, R3), jnp.float32),
        grid=(N,),
        in_specs=[
            pl.BlockSpec((1, 4, cin, S), lambda b: (b, 0, 0, 0)),  # image phases
            pl.BlockSpec((c1, 9 * cin), lambda b: (0, 0)),         # w1
            pl.BlockSpec((c1, 1), lambda b: (0, 0)),               # b1
            pl.BlockSpec((c2, 9 * c1), lambda b: (0, 0)),          # w2
            pl.BlockSpec((c2, 1), lambda b: (0, 0)),               # b2
            pl.BlockSpec((c3, 9 * c2), lambda b: (0, 0)),          # w3
            pl.BlockSpec((c3, 1), lambda b: (0, 0)),               # b3
            pl.BlockSpec((8, c3), lambda b: (0, 0)),               # fused head w
            pl.BlockSpec((8, 1), lambda b: (0, 0)),                # fused head b
        ],
        out_specs=pl.BlockSpec((1, 8, R3), lambda b: (b, 0, 0)),
        compiler_params=pltpu.CompilerParams(
            dimension_semantics=("parallel",),
            vmem_limit_bytes=vmem_limit),
    )(xph, w1, b1, w2, b2, w3, b3, wh, bh)

    # Glue: pick the OH3 x OW3 valid positions, split heads, return NCHW.
    idx = (jnp.arange(OH3)[:, None] * WP + jnp.arange(OW3)[None, :]).reshape(-1)
    out = jnp.take(out_full, idx, axis=2).reshape(N, 8, OH3, OW3)
    cls = out[:, 0:1]                                             # (N, 1, OH3, OW3)
    reg = out[:, 1:5]                                             # (N, 4, OH3, OW3)
    return cls, reg


# ----------------------------------------------------------------------------
# Pure-JAX reference (f32) for a tolerance check of the bf16 kernel
# ----------------------------------------------------------------------------

def pnet_reference(params, x, alphas):
    a1, a2, a3 = alphas
    dn = ("NCHW", "OIHW", "NCHW")

    def conv(v, w, b):
        y = lax.conv_general_dilated(v, w, (1, 1), "VALID",
                                     dimension_numbers=dn,
                                     precision=lax.Precision.HIGHEST)
        return y + b[None, :, None, None]

    y = conv(x, params["conv1_w"], params["conv1_b"])
    y = lax.reduce_window(y, -jnp.inf, lax.max, (1, 1, 2, 2), (1, 1, 2, 2), "VALID")
    y = jnp.where(y > 0, y, a1 * y)
    y = conv(y, params["conv2_w"], params["conv2_b"])
    y = jnp.where(y > 0, y, a2 * y)
    y = conv(y, params["conv3_w"], params["conv3_b"])
    y = jnp.where(y > 0, y, a3 * y)
    cls = jax.nn.sigmoid(conv(y, params["cls_w"], params["cls_b"]))
    reg = conv(y, params["reg_w"], params["reg_b"])
    return cls, reg


# ----------------------------------------------------------------------------
# Deterministic parameters (matches PNet.__init__ shapes; PReLU init = 0.25)
# ----------------------------------------------------------------------------

def init_params(key):
    keys = jax.random.split(key, 10)

    def normal(k, shape, scale=0.1):
        return scale * jax.random.normal(k, shape, dtype=jnp.float32)

    weights = {
        "conv1_w": normal(keys[0], (10, 3, 3, 3)),
        "conv1_b": normal(keys[1], (10,)),
        "conv2_w": normal(keys[2], (16, 10, 3, 3)),
        "conv2_b": normal(keys[3], (16,)),
        "conv3_w": normal(keys[4], (32, 16, 3, 3)),
        "conv3_b": normal(keys[5], (32,)),
        "cls_w":   normal(keys[6], (1, 32, 1, 1)),
        "cls_b":   normal(keys[7], (1,)),
        "reg_w":   normal(keys[8], (4, 32, 1, 1)),
        "reg_b":   normal(keys[9], (4,)),
    }
    alphas = (0.25, 0.25, 0.25)   # nn.PReLU() default init (single scalar each)
    return weights, alphas


# ----------------------------------------------------------------------------
# Main
# ----------------------------------------------------------------------------

if __name__ == "__main__":
    key = jax.random.PRNGKey(0)
    k_in, k_par = jax.random.split(key)

    # 3-channel 16x16 images: conv/pool/conv/conv -> 3x3 output maps.
    x = jax.random.normal(k_in, (2, 3, 16, 16), dtype=jnp.float32)
    params, alphas = init_params(k_par)

    fwd = jax.jit(pnet_forward, static_argnames=("alphas",))
    cls_out, reg_out = fwd(params, x, alphas=alphas)
    jax.block_until_ready((cls_out, reg_out))

    assert cls_out.shape == (2, 1, 3, 3), cls_out.shape
    assert reg_out.shape == (2, 4, 3, 3), reg_out.shape
    assert bool(jnp.all((cls_out > -1e-3) & (cls_out < 1.0 + 1e-3)))
    assert bool(jnp.all(jnp.isfinite(reg_out)))

    # bf16 matmuls (f32 accumulate) vs. an f32 reference: tolerance check.
    cls_ref, reg_ref = pnet_reference(params, x, alphas)
    cls_err = float(jnp.max(jnp.abs(cls_out - cls_ref)))
    reg_err = float(jnp.max(jnp.abs(reg_out - reg_ref)))
    assert cls_err < 0.08 and reg_err < 0.08, (cls_err, reg_err)

    print("KERNEL_OK")
</pallas_src>

<mosaic_0001>
module attributes {stable_mosaic.version = 11 : i64} {
  func.func @kernel(%arg0: i32, %arg1: memref<1x4x3x64xbf16, #tpu.memory_space<vmem>>, %arg2: memref<10x27xbf16, #tpu.memory_space<vmem>>, %arg3: memref<10x1xf32, #tpu.memory_space<vmem>>, %arg4: memref<16x90xbf16, #tpu.memory_space<vmem>>, %arg5: memref<16x1xf32, #tpu.memory_space<vmem>>, %arg6: memref<32x144xbf16, #tpu.memory_space<vmem>>, %arg7: memref<32x1xf32, #tpu.memory_space<vmem>>, %arg8: memref<8x32xbf16, #tpu.memory_space<vmem>>, %arg9: memref<8x1xf32, #tpu.memory_space<vmem>>, %arg10: memref<1x8x19xf32, #tpu.memory_space<vmem>>) attributes {dimension_semantics = [#tpu.dimension_semantics<parallel>], iteration_bounds = array<i64: 2>, scalar_prefetch = 0 : i64, scratch_operands = 0 : i64, tpu.core_type = #tpu.core_type<tc>, window_params = [{transform_indices = @transform_0, window_bounds = array<i64: 1, 4, 3, 64>}, {pipeline_mode = #tpu.pipeline_mode<synchronous>, transform_indices = @transform_1, window_bounds = array<i64: 10, 27>}, {pipeline_mode = #tpu.pipeline_mode<synchronous>, transform_indices = @transform_2, window_bounds = array<i64: 10, 1>}, {pipeline_mode = #tpu.pipeline_mode<synchronous>, transform_indices = @transform_3, window_bounds = array<i64: 16, 90>}, {pipeline_mode = #tpu.pipeline_mode<synchronous>, transform_indices = @transform_4, window_bounds = array<i64: 16, 1>}, {pipeline_mode = #tpu.pipeline_mode<synchronous>, transform_indices = @transform_5, window_bounds = array<i64: 32, 144>}, {pipeline_mode = #tpu.pipeline_mode<synchronous>, transform_indices = @transform_6, window_bounds = array<i64: 32, 1>}, {pipeline_mode = #tpu.pipeline_mode<synchronous>, transform_indices = @transform_7, window_bounds = array<i64: 8, 32>}, {pipeline_mode = #tpu.pipeline_mode<synchronous>, transform_indices = @transform_8, window_bounds = array<i64: 8, 1>}, {transform_indices = @transform_9, window_bounds = array<i64: 1, 8, 19>}]} {
    %c0 = arith.constant 0 : index
    %c0_0 = arith.constant 0 : index
    %c0_1 = arith.constant 0 : index
    %c0_2 = arith.constant 0 : index
    %0 = vector.load %arg1[%c0, %c0_0, %c0_1, %c0_2] : memref<1x4x3x64xbf16, #tpu.memory_space<vmem>>, vector<1x4x3x64xbf16>
    %1 = vector.shape_cast %0 : vector<1x4x3x64xbf16> to vector<4x3x64xbf16>
    %2 = vector.extract_strided_slice %1 {offsets = [0, 0, 0], sizes = [1, 3, 55], strides = [1, 1, 1]} : vector<4x3x64xbf16> to vector<1x3x55xbf16>
    %3 = vector.shape_cast %2 : vector<1x3x55xbf16> to vector<3x55xbf16>
    %4 = vector.extract_strided_slice %1 {offsets = [0, 0, 1], sizes = [1, 3, 55], strides = [1, 1, 1]} : vector<4x3x64xbf16> to vector<1x3x55xbf16>
    %5 = vector.shape_cast %4 : vector<1x3x55xbf16> to vector<3x55xbf16>
    %6 = vector.extract_strided_slice %1 {offsets = [0, 0, 8], sizes = [1, 3, 55], strides = [1, 1, 1]} : vector<4x3x64xbf16> to vector<1x3x55xbf16>
    %7 = vector.shape_cast %6 : vector<1x3x55xbf16> to vector<3x55xbf16>
    %8 = vector.extract_strided_slice %1 {offsets = [0, 0, 9], sizes = [1, 3, 55], strides = [1, 1, 1]} : vector<4x3x64xbf16> to vector<1x3x55xbf16>
    %9 = vector.shape_cast %8 : vector<1x3x55xbf16> to vector<3x55xbf16>
    %10 = vector.extract_strided_slice %1 {offsets = [1, 0, 0], sizes = [1, 3, 55], strides = [1, 1, 1]} : vector<4x3x64xbf16> to vector<1x3x55xbf16>
    %11 = vector.shape_cast %10 : vector<1x3x55xbf16> to vector<3x55xbf16>
    %12 = vector.extract_strided_slice %1 {offsets = [1, 0, 1], sizes = [1, 3, 55], strides = [1, 1, 1]} : vector<4x3x64xbf16> to vector<1x3x55xbf16>
    %13 = vector.shape_cast %12 : vector<1x3x55xbf16> to vector<3x55xbf16>
    %14 = vector.extract_strided_slice %1 {offsets = [1, 0, 8], sizes = [1, 3, 55], strides = [1, 1, 1]} : vector<4x3x64xbf16> to vector<1x3x55xbf16>
    %15 = vector.shape_cast %14 : vector<1x3x55xbf16> to vector<3x55xbf16>
    %16 = vector.extract_strided_slice %1 {offsets = [1, 0, 9], sizes = [1, 3, 55], strides = [1, 1, 1]} : vector<4x3x64xbf16> to vector<1x3x55xbf16>
    %17 = vector.shape_cast %16 : vector<1x3x55xbf16> to vector<3x55xbf16>
    %18 = vector.extract_strided_slice %1 {offsets = [2, 0, 0], sizes = [1, 3, 55], strides = [1, 1, 1]} : vector<4x3x64xbf16> to vector<1x3x55xbf16>
    %19 = vector.shape_cast %18 : vector<1x3x55xbf16> to vector<3x55xbf16>
    %20 = vector.extract_strided_slice %1 {offsets = [2, 0, 1], sizes = [1, 3, 55], strides = [1, 1, 1]} : vector<4x3x64xbf16> to vector<1x3x55xbf16>
    %21 = vector.shape_cast %20 : vector<1x3x55xbf16> to vector<3x55xbf16>
    %22 = vector.extract_strided_slice %1 {offsets = [2, 0, 8], sizes = [1, 3, 55], strides = [1, 1, 1]} : vector<4x3x64xbf16> to vector<1x3x55xbf16>
    %23 = vector.shape_cast %22 : vector<1x3x55xbf16> to vector<3x55xbf16>
    %24 = vector.extract_strided_slice %1 {offsets = [2, 0, 9], sizes = [1, 3, 55], strides = [1, 1, 1]} : vector<4x3x64xbf16> to vector<1x3x55xbf16>
    %25 = vector.shape_cast %24 : vector<1x3x55xbf16> to vector<3x55xbf16>
    %26 = vector.extract_strided_slice %1 {offsets = [3, 0, 0], sizes = [1, 3, 55], strides = [1, 1, 1]} : vector<4x3x64xbf16> to vector<1x3x55xbf16>
    %27 = vector.shape_cast %26 : vector<1x3x55xbf16> to vector<3x55xbf16>
    %28 = vector.extract_strided_slice %1 {offsets = [3, 0, 1], sizes = [1, 3, 55], strides = [1, 1, 1]} : vector<4x3x64xbf16> to vector<1x3x55xbf16>
    %29 = vector.shape_cast %28 : vector<1x3x55xbf16> to vector<3x55xbf16>
    %30 = vector.extract_strided_slice %1 {offsets = [3, 0, 8], sizes = [1, 3, 55], strides = [1, 1, 1]} : vector<4x3x64xbf16> to vector<1x3x55xbf16>
    %31 = vector.shape_cast %30 : vector<1x3x55xbf16> to vector<3x55xbf16>
    %32 = vector.extract_strided_slice %1 {offsets = [3, 0, 9], sizes = [1, 3, 55], strides = [1, 1, 1]} : vector<4x3x64xbf16> to vector<1x3x55xbf16>
    %33 = vector.shape_cast %32 : vector<1x3x55xbf16> to vector<3x55xbf16>
    %34 = tpu.concatenate %3, %11, %5, %19, %27, %21, %7, %15, %9 in 0 : vector<3x55xbf16>, vector<3x55xbf16>, vector<3x55xbf16>, vector<3x55xbf16>, vector<3x55xbf16>, vector<3x55xbf16>, vector<3x55xbf16>, vector<3x55xbf16>, vector<3x55xbf16> -> vector<27x55xbf16>
    %c0_3 = arith.constant 0 : index
    %c0_4 = arith.constant 0 : index
    %35 = vector.load %arg2[%c0_3, %c0_4] : memref<10x27xbf16, #tpu.memory_space<vmem>>, vector<10x27xbf16>
    %cst = arith.constant dense<0.000000e+00> : vector<10x55xf32>
    %36 = tpu.matmul %35, %34, %cst {dimension_numbers = #tpu.dot_dimension_numbers<[1], [0], [0], [1], [0, 0, 1, 1], [], []>} : vector<10x27xbf16>, vector<27x55xbf16>, vector<10x55xf32> -> vector<10x55xf32>
    %37 = tpu.concatenate %11, %5, %13, %27, %21, %29, %15, %9, %17 in 0 : vector<3x55xbf16>, vector<3x55xbf16>, vector<3x55xbf16>, vector<3x55xbf16>, vector<3x55xbf16>, vector<3x55xbf16>, vector<3x55xbf16>, vector<3x55xbf16>, vector<3x55xbf16> -> vector<27x55xbf16>
    %c0_5 = arith.constant 0 : index
    %c0_6 = arith.constant 0 : index
    %38 = vector.load %arg2[%c0_5, %c0_6] : memref<10x27xbf16, #tpu.memory_space<vmem>>, vector<10x27xbf16>
    %cst_7 = arith.constant dense<0.000000e+00> : vector<10x55xf32>
    %39 = tpu.matmul %38, %37, %cst_7 {dimension_numbers = #tpu.dot_dimension_numbers<[1], [0], [0], [1], [0, 0, 1, 1], [], []>} : vector<10x27xbf16>, vector<27x55xbf16>, vector<10x55xf32> -> vector<10x55xf32>
    %40 = arith.maximumf %36, %39 : vector<10x55xf32>
    %41 = tpu.concatenate %19, %27, %21, %7, %15, %9, %23, %31, %25 in 0 : vector<3x55xbf16>, vector<3x55xbf16>, vector<3x55xbf16>, vector<3x55xbf16>, vector<3x55xbf16>, vector<3x55xbf16>, vector<3x55xbf16>, vector<3x55xbf16>, vector<3x55xbf16> -> vector<27x55xbf16>
    %c0_8 = arith.constant 0 : index
    %c0_9 = arith.constant 0 : index
    %42 = vector.load %arg2[%c0_8, %c0_9] : memref<10x27xbf16, #tpu.memory_space<vmem>>, vector<10x27xbf16>
    %cst_10 = arith.constant dense<0.000000e+00> : vector<10x55xf32>
    %43 = tpu.matmul %42, %41, %cst_10 {dimension_numbers = #tpu.dot_dimension_numbers<[1], [0], [0], [1], [0, 0, 1, 1], [], []>} : vector<10x27xbf16>, vector<27x55xbf16>, vector<10x55xf32> -> vector<10x55xf32>
    %44 = tpu.concatenate %27, %21, %29, %15, %9, %17, %31, %25, %33 in 0 : vector<3x55xbf16>, vector<3x55xbf16>, vector<3x55xbf16>, vector<3x55xbf16>, vector<3x55xbf16>, vector<3x55xbf16>, vector<3x55xbf16>, vector<3x55xbf16>, vector<3x55xbf16> -> vector<27x55xbf16>
    %c0_11 = arith.constant 0 : index
    %c0_12 = arith.constant 0 : index
    %45 = vector.load %arg2[%c0_11, %c0_12] : memref<10x27xbf16, #tpu.memory_space<vmem>>, vector<10x27xbf16>
    %cst_13 = arith.constant dense<0.000000e+00> : vector<10x55xf32>
    %46 = tpu.matmul %45, %44, %cst_13 {dimension_numbers = #tpu.dot_dimension_numbers<[1], [0], [0], [1], [0, 0, 1, 1], [], []>} : vector<10x27xbf16>, vector<27x55xbf16>, vector<10x55xf32> -> vector<10x55xf32>
    %47 = arith.maximumf %43, %46 : vector<10x55xf32>
    %48 = arith.maximumf %40, %47 : vector<10x55xf32>
    %c0_14 = arith.constant 0 : index
    %c0_15 = arith.constant 0 : index
    %49 = vector.load %arg3[%c0_14, %c0_15] : memref<10x1xf32, #tpu.memory_space<vmem>>, vector<10x1xf32>
    %50 = vector.broadcast %49 : vector<10x1xf32> to vector<10x55xf32>
    %51 = arith.addf %48, %50 : vector<10x55xf32>
    %cst_16 = arith.constant 0.000000e+00 : f32
    %52 = vector.broadcast %cst_16 : f32 to vector<10x55xf32>
    %53 = arith.cmpf ogt, %51, %52 : vector<10x55xf32>
    %cst_17 = arith.constant 2.500000e-01 : f32
    %54 = vector.broadcast %cst_17 : f32 to vector<10x55xf32>
    %55 = arith.mulf %54, %51 : vector<10x55xf32>
    %56 = arith.select %53, %51, %55 : vector<10x55xi1>, vector<10x55xf32>
    %57 = arith.truncf %56 : vector<10x55xf32> to vector<10x55xbf16>
    %c0_18 = arith.constant 0 : index
    %c0_19 = arith.constant 0 : index
    %58 = vector.load %arg4[%c0_18, %c0_19] : memref<16x90xbf16, #tpu.memory_space<vmem>>, vector<16x90xbf16>
    %59 = vector.extract_strided_slice %57 {offsets = [0, 0], sizes = [10, 37], strides = [1, 1]} : vector<10x55xbf16> to vector<10x37xbf16>
    %60 = vector.extract_strided_slice %57 {offsets = [0, 1], sizes = [10, 37], strides = [1, 1]} : vector<10x55xbf16> to vector<10x37xbf16>
    %61 = vector.extract_strided_slice %57 {offsets = [0, 2], sizes = [10, 37], strides = [1, 1]} : vector<10x55xbf16> to vector<10x37xbf16>
    %62 = vector.extract_strided_slice %57 {offsets = [0, 8], sizes = [10, 37], strides = [1, 1]} : vector<10x55xbf16> to vector<10x37xbf16>
    %63 = vector.extract_strided_slice %57 {offsets = [0, 9], sizes = [10, 37], strides = [1, 1]} : vector<10x55xbf16> to vector<10x37xbf16>
    %64 = vector.extract_strided_slice %57 {offsets = [0, 10], sizes = [10, 37], strides = [1, 1]} : vector<10x55xbf16> to vector<10x37xbf16>
    %65 = vector.extract_strided_slice %57 {offsets = [0, 16], sizes = [10, 37], strides = [1, 1]} : vector<10x55xbf16> to vector<10x37xbf16>
    %66 = vector.extract_strided_slice %57 {offsets = [0, 17], sizes = [10, 37], strides = [1, 1]} : vector<10x55xbf16> to vector<10x37xbf16>
    %67 = vector.extract_strided_slice %57 {offsets = [0, 18], sizes = [10, 37], strides = [1, 1]} : vector<10x55xbf16> to vector<10x37xbf16>
    %68 = tpu.concatenate %59, %60, %61, %62, %63, %64, %65, %66, %67 in 0 : vector<10x37xbf16>, vector<10x37xbf16>, vector<10x37xbf16>, vector<10x37xbf16>, vector<10x37xbf16>, vector<10x37xbf16>, vector<10x37xbf16>, vector<10x37xbf16>, vector<10x37xbf16> -> vector<90x37xbf16>
    %cst_20 = arith.constant dense<0.000000e+00> : vector<16x37xf32>
    %69 = tpu.matmul %58, %68, %cst_20 {dimension_numbers = #tpu.dot_dimension_numbers<[1], [0], [0], [1], [0, 0, 1, 1], [], []>} : vector<16x90xbf16>, vector<90x37xbf16>, vector<16x37xf32> -> vector<16x37xf32>
    %c0_21 = arith.constant 0 : index
    %c0_22 = arith.constant 0 : index
    %70 = vector.load %arg5[%c0_21, %c0_22] : memref<16x1xf32, #tpu.memory_space<vmem>>, vector<16x1xf32>
    %71 = vector.broadcast %70 : vector<16x1xf32> to vector<16x37xf32>
    %72 = arith.addf %69, %71 : vector<16x37xf32>
    %cst_23 = arith.constant 0.000000e+00 : f32
    %73 = vector.broadcast %cst_23 : f32 to vector<16x37xf32>
    %74 = arith.cmpf ogt, %72, %73 : vector<16x37xf32>
    %cst_24 = arith.constant 2.500000e-01 : f32
    %75 = vector.broadcast %cst_24 : f32 to vector<16x37xf32>
    %76 = arith.mulf %75, %72 : vector<16x37xf32>
    %77 = arith.select %74, %72, %76 : vector<16x37xi1>, vector<16x37xf32>
    %78 = arith.truncf %77 : vector<16x37xf32> to vector<16x37xbf16>
    %c0_25 = arith.constant 0 : index
    %c0_26 = arith.constant 0 : index
    %79 = vector.load %arg6[%c0_25, %c0_26] : memref<32x144xbf16, #tpu.memory_space<vmem>>, vector<32x144xbf16>
    %80 = vector.extract_strided_slice %78 {offsets = [0, 0], sizes = [16, 19], strides = [1, 1]} : vector<16x37xbf16> to vector<16x19xbf16>
    %81 = vector.extract_strided_slice %78 {offsets = [0, 1], sizes = [16, 19], strides = [1, 1]} : vector<16x37xbf16> to vector<16x19xbf16>
    %82 = vector.extract_strided_slice %78 {offsets = [0, 2], sizes = [16, 19], strides = [1, 1]} : vector<16x37xbf16> to vector<16x19xbf16>
    %83 = vector.extract_strided_slice %78 {offsets = [0, 8], sizes = [16, 19], strides = [1, 1]} : vector<16x37xbf16> to vector<16x19xbf16>
    %84 = vector.extract_strided_slice %78 {offsets = [0, 9], sizes = [16, 19], strides = [1, 1]} : vector<16x37xbf16> to vector<16x19xbf16>
    %85 = vector.extract_strided_slice %78 {offsets = [0, 10], sizes = [16, 19], strides = [1, 1]} : vector<16x37xbf16> to vector<16x19xbf16>
    %86 = vector.extract_strided_slice %78 {offsets = [0, 16], sizes = [16, 19], strides = [1, 1]} : vector<16x37xbf16> to vector<16x19xbf16>
    %87 = vector.extract_strided_slice %78 {offsets = [0, 17], sizes = [16, 19], strides = [1, 1]} : vector<16x37xbf16> to vector<16x19xbf16>
    %88 = vector.extract_strided_slice %78 {offsets = [0, 18], sizes = [16, 19], strides = [1, 1]} : vector<16x37xbf16> to vector<16x19xbf16>
    %89 = tpu.concatenate %80, %81, %82, %83, %84, %85, %86, %87, %88 in 0 : vector<16x19xbf16>, vector<16x19xbf16>, vector<16x19xbf16>, vector<16x19xbf16>, vector<16x19xbf16>, vector<16x19xbf16>, vector<16x19xbf16>, vector<16x19xbf16>, vector<16x19xbf16> -> vector<144x19xbf16>
    %cst_27 = arith.constant dense<0.000000e+00> : vector<32x19xf32>
    %90 = tpu.matmul %79, %89, %cst_27 {dimension_numbers = #tpu.dot_dimension_numbers<[1], [0], [0], [1], [0, 0, 1, 1], [], []>} : vector<32x144xbf16>, vector<144x19xbf16>, vector<32x19xf32> -> vector<32x19xf32>
    %c0_28 = arith.constant 0 : index
    %c0_29 = arith.constant 0 : index
    %91 = vector.load %arg7[%c0_28, %c0_29] : memref<32x1xf32, #tpu.memory_space<vmem>>, vector<32x1xf32>
    %92 = vector.broadcast %91 : vector<32x1xf32> to vector<32x19xf32>
    %93 = arith.addf %90, %92 : vector<32x19xf32>
    %cst_30 = arith.constant 0.000000e+00 : f32
    %94 = vector.broadcast %cst_30 : f32 to vector<32x19xf32>
    %95 = arith.cmpf ogt, %93, %94 : vector<32x19xf32>
    %cst_31 = arith.constant 2.500000e-01 : f32
    %96 = vector.broadcast %cst_31 : f32 to vector<32x19xf32>
    %97 = arith.mulf %96, %93 : vector<32x19xf32>
    %98 = arith.select %95, %93, %97 : vector<32x19xi1>, vector<32x19xf32>
    %99 = arith.truncf %98 : vector<32x19xf32> to vector<32x19xbf16>
    %c0_32 = arith.constant 0 : index
    %c0_33 = arith.constant 0 : index
    %100 = vector.load %arg8[%c0_32, %c0_33] : memref<8x32xbf16, #tpu.memory_space<vmem>>, vector<8x32xbf16>
    %cst_34 = arith.constant dense<0.000000e+00> : vector<8x19xf32>
    %101 = tpu.matmul %100, %99, %cst_34 {dimension_numbers = #tpu.dot_dimension_numbers<[1], [0], [0], [1], [0, 0, 1, 1], [], []>} : vector<8x32xbf16>, vector<32x19xbf16>, vector<8x19xf32> -> vector<8x19xf32>
    %c0_35 = arith.constant 0 : index
    %c0_36 = arith.constant 0 : index
    %102 = vector.load %arg9[%c0_35, %c0_36] : memref<8x1xf32, #tpu.memory_space<vmem>>, vector<8x1xf32>
    %103 = vector.broadcast %102 : vector<8x1xf32> to vector<8x19xf32>
    %104 = arith.addf %101, %103 : vector<8x19xf32>
    %105 = tpu.iota {dimensions = array<i32: 0>} : vector<8x19xi32>
    %cst_37 = arith.constant 0.000000e+00 : f32
    %106 = vector.broadcast %cst_37 : f32 to vector<8x19xf32>
    %107 = arith.subf %106, %104 : vector<8x19xf32>
    %108 = math.exp %107 : vector<8x19xf32>
    %cst_38 = arith.constant 1.000000e+00 : f32
    %109 = vector.broadcast %cst_38 : f32 to vector<8x19xf32>
    %110 = arith.addf %109, %108 : vector<8x19xf32>
    %111 = tpu.reciprocal %110 {approx = true} : vector<8x19xf32> -> vector<8x19xf32>
    %c0_i32 = arith.constant 0 : i32
    %112 = vector.broadcast %c0_i32 : i32 to vector<8x19xi32>
    %113 = arith.cmpi eq, %105, %112 : vector<8x19xi32>
    %114 = arith.select %113, %111, %104 : vector<8x19xi1>, vector<8x19xf32>
    %c0_39 = arith.constant 0 : index
    %c0_40 = arith.constant 0 : index
    %c0_41 = arith.constant 0 : index
    %115 = vector.load %arg10[%c0_39, %c0_40, %c0_41] : memref<1x8x19xf32, #tpu.memory_space<vmem>>, vector<1x8x19xf32>
    %116 = vector.shape_cast %115 : vector<1x8x19xf32> to vector<8x19xf32>
    %117 = vector.shape_cast %114 : vector<8x19xf32> to vector<1x8x19xf32>
    tpu.vector_store %arg10[%c0_39, %c0_40, %c0_41], %117 {strides = array<i32>} : memref<1x8x19xf32, #tpu.memory_space<vmem>>, vector<1x8x19xf32>,
    return
  }
  func.func @transform_0(%arg0: i32) -> (i32, i32, i32, i32) {
    %c0_i32 = arith.constant 0 : i32
    %c0_i32_0 = arith.constant 0 : i32
    %c0_i32_1 = arith.constant 0 : i32
    %c0_i32_2 = arith.constant 0 : i32
    return %arg0, %c0_i32, %c0_i32_0, %c0_i32_1 : i32, i32, i32, i32
  }
  func.func @transform_1(%arg0: i32) -> (i32, i32) {
    %c0_i32 = arith.constant 0 : i32
    %c0_i32_0 = arith.constant 0 : i32
    %c0_i32_1 = arith.constant 0 : i32
    return %c0_i32, %c0_i32_0 : i32, i32
  }
  func.func @transform_2(%arg0: i32) -> (i32, i32) {
    %c0_i32 = arith.constant 0 : i32
    %c0_i32_0 = arith.constant 0 : i32
    %c0_i32_1 = arith.constant 0 : i32
    return %c0_i32, %c0_i32_0 : i32, i32
  }
  func.func @transform_3(%arg0: i32) -> (i32, i32) {
    %c0_i32 = arith.constant 0 : i32
    %c0_i32_0 = arith.constant 0 : i32
    %c0_i32_1 = arith.constant 0 : i32
    return %c0_i32, %c0_i32_0 : i32, i32
  }
  func.func @transform_4(%arg0: i32) -> (i32, i32) {
    %c0_i32 = arith.constant 0 : i32
    %c0_i32_0 = arith.constant 0 : i32
    %c0_i32_1 = arith.constant 0 : i32
    return %c0_i32, %c0_i32_0 : i32, i32
  }
  func.func @transform_5(%arg0: i32) -> (i32, i32) {
    %c0_i32 = arith.constant 0 : i32
    %c0_i32_0 = arith.constant 0 : i32
    %c0_i32_1 = arith.constant 0 : i32
    return %c0_i32, %c0_i32_0 : i32, i32
  }
  func.func @transform_6(%arg0: i32) -> (i32, i32) {
    %c0_i32 = arith.constant 0 : i32
    %c0_i32_0 = arith.constant 0 : i32
    %c0_i32_1 = arith.constant 0 : i32
    return %c0_i32, %c0_i32_0 : i32, i32
  }
  func.func @transform_7(%arg0: i32) -> (i32, i32) {
    %c0_i32 = arith.constant 0 : i32
    %c0_i32_0 = arith.constant 0 : i32
    %c0_i32_1 = arith.constant 0 : i32
    return %c0_i32, %c0_i32_0 : i32, i32
  }
  func.func @transform_8(%arg0: i32) -> (i32, i32) {
    %c0_i32 = arith.constant 0 : i32
    %c0_i32_0 = arith.constant 0 : i32
    %c0_i32_1 = arith.constant 0 : i32
    return %c0_i32, %c0_i32_0 : i32, i32
  }
  func.func @transform_9(%arg0: i32) -> (i32, i32, i32) {
    %c0_i32 = arith.constant 0 : i32
    %c0_i32_0 = arith.constant 0 : i32
    %c0_i32_1 = arith.constant 0 : i32
    return %arg0, %c0_i32, %c0_i32_0 : i32, i32, i32
  }
}

</mosaic_0001>

<bundles_post_ra>
// kernel: pnet_forward.1
= control target key start
LH: loop header
LB: loop body
LE: loop exit
PB: predicated region body
PF: predicated region fallthrough
CT: control target
= control target key end

     0   :  { %s1462_s30 = smov 0   ;;  %s1844_s0 = inlined_call_operand.vmem [shape: bf16[2,4,3,64], index: 0, kind: input, shape index: {}]   ;;  %s1845_s1 = inlined_call_operand.vmem [shape: bf16[10,27], index: 1, kind: input, shape index: {}]   ;;  %s1846_s2 = inlined_call_operand.vmem [shape: f32[10,1], index: 2, kind: input, shape index: {}]   ;;  %s1847_s3 = inlined_call_operand.vmem [shape: bf16[16,90], index: 3, kind: input, shape index: {}]   ;;  %s1848_s4 = inlined_call_operand.vmem [shape: f32[16,1], index: 4, kind: input, shape index: {}]   ;;  %s1849_s5 = inlined_call_operand.vmem [shape: bf16[32,144], index: 5, kind: input, shape index: {}]   ;;  %s1850_s6 = inlined_call_operand.vmem [shape: f32[32,1], index: 6, kind: input, shape index: {}]   ;;  %s1851_s7 = inlined_call_operand.vmem [shape: bf16[8,32], index: 7, kind: input, shape index: {}]   ;;  %s1852_s8 = inlined_call_operand.vmem [shape: f32[8,1], index: 8, kind: input, shape index: {}]   ;;  %s1853_s9 = inlined_call_operand.vmem [shape: f32[2,8,19], index: 9, kind: output, shape index: {}]  }
   0x1 LB: > { %s1239_s10 = sadd.s32 4294967295, %s1397_s30   ;;  %p1243_p0 = scmp.ge.s32.totalorder %s1397_s30, 1  ;;  %s1397_s30 = sphi %s1462_s30, %s19_s30  }
   0x2   : > { %p287_p1 = scmp.lt.s32.totalorder %s1397_s30, 3 }
   0x4   : > { %p288_p2 = pnand %p1243_p0, %p287_p1 }
   0x5   : > { %p322_p3 = scmp.lt.s32.totalorder (!%p288_p2), %s1239_s10, 1  ;;  %v340_v0 = vlaneseq (!%p288_p2)  ;;  %v1399_v1 = vmov (!%p288_p2), 1983009808   ;;  %v1400_v5 = vmov (!%p288_p2), 0.0   ;;  %s1401_s15 = smov (!%p288_p2), 120   ;;  %vm417_vm0 = vcmask (!%p288_p2), 1041408  }
   0x6   : > { %291 = sbr.rel (%p288_p2) target bundleno = 1408 (0x580), region = 56  ;;  %v338_v2 = vunpack.c.l.s4 (!%p288_p2), %v1399_v1  ;;  %1286 = vmatprep.subr.bf16.mxu0 (!%p288_p2), %v1400_v5  ;;  %1310 = vmatprep.subr.bf16.mxu1 (!%p288_p2), %v1400_v5  ;;  %s1402_s16 = smov (!%p288_p2), 127   ;;  %vm418_vm1 = vsmask.f32 (!%p288_p2), 1280  ;;  %vm1404_vm3 = vmmov (!%p288_p2), 0   ;;  %vm426_vm4 = vcmask (!%p288_p2), 1044480  }
   0x7   : > { %v1472_v3 = vshrl.u32 (!%p288_p2), %v340_v0, 7  ;;  %s1403_s17 = smov (!%p288_p2), 119   ;;  %vm1556_vm2 = vmand (!%p288_p2), %vm417_vm0, %vm418_vm1  ;;  %1290 = vmatprep.mubr.msk.bf16.mxu0 (!%p288_p2), %vm1404_vm3, %v1400_v5  ;;  %1314 = vmatprep.mubr.msk.bf16.mxu1 (!%p288_p2), %vm1404_vm3, %v1400_v5  ;;  %vm427_vm5 = vsmask.f32 (!%p288_p2), 4352  ;;  %vm421_vm6 = vcmask (!%p288_p2), 1042432   ;;  %vm430_vm8 = vcmask (!%p288_p2), 1045504  }
   0x8   : > { %v339_v4 = vunpack.c.0.s8 (!%p288_p2), %v338_v2  ;;  %vm1648_vm7 = vmand (!%p288_p2), %vm426_vm4, %vm427_vm5  ;;  %vm435_vm9 = vcmask (!%p288_p2), 1047552   ;;  %vm436_vm10 = vsmask.f32 (!%p288_p2), 7424  ;;  %vm445_vm12 = vsmask.f32 (!%p288_p2), 2304  ;;  %s1407_s24 = smov (!%p288_p2), 118  }
   0x9   : > { %vm1662_vm11 = vmand (!%p288_p2), %vm435_vm9, %vm436_vm10  ;;  %vm439_vm13 = vcmask (!%p288_p2), 1040384   ;;  %vm448_vm15 = vcmask (!%p288_p2), 1043456   ;;  %vm459_vm1 = vcmask (!%p288_p2), 220160   ;;  %s1408_s25 = smov (!%p288_p2), 126   ;;  %s1409_s26 = smov (!%p288_p2), 111  }
   0xa   : > { %v1483_v6 = vsub.s32 (!%p288_p2), %v339_v4, %v1472_v3  ;;  %vm1671_vm14 = vmand (!%p288_p2), %vm421_vm6, %vm445_vm12  ;;  %s1410_s29 = smov (!%p288_p2), 112   ;;  %s1411_s12 = smov (!%p288_p2), 110   ;;  %vm1131_vm12 = vcmask (!%p288_p2), 261120  }
   0xd   : > { %s1863_s10 = smov (!%p322_p3, %s1239_s10), 1 }
   0xe   : > { %s1263_s11 = sshll.u32 %s1863_s10, 3 }
   0xf   : > { %s326_s14 = scalar_lea.vmem %s1844_s0, %s1263_s11  ;;  %s330_s23 = scalar_lea.vmem %s1853_s9, %s1263_s11 }
  0x10   : > { %v1485_v7 = vld [vmem:[%s326_s14] sm:$0x3]  ;;  %v1487_v8 = vld [vmem:[%s326_s14 + $0x4] sm:$0x3]  ;;  %v1489_v9 = vld [vmem:[%s326_s14 + $0x6] sm:$0x3] }
  0x11   : > { %v360_v10 = vrot.slane %v1485_v7, %v1483_v6  ;;  %v1495_v11 = vrot.slane %v1487_v8, %v1483_v6  ;;  %v1499_v12 = vrot.slane %v1489_v9, %v1483_v6  ;;  %v1501_v13 = vld [vmem:[%s326_s14 + $0x2] sm:$0x3]  ;;  %v532_v34 = vcombine.low %v1487_v8, %v1487_v8 }
  0x12   : > { %v1505_v14 = vrot.slane %v1501_v13, %v1483_v6  ;;  %v746_v4 = vcombine.low %v1485_v7, %v1485_v7 }
  0x13   : > { %v405_v15 = vrot.slane %v360_v10, 7  ;;  %v361_v16 = vrot.slane %v360_v10, 5  ;;  %v1508_v17 = vshll.u32 %v1495_v11, 16  ;;  %v1511_v18 = vshll.u32 %v1499_v12, 16 }
  0x14   : > { %v1514_v19 = vshrl.u32 %v1505_v14, 16  ;;  %v1517_v20 = vshll.u32 %v1505_v14, 16  ;;  %v414_v21 = vcombine.low %v360_v10, %v360_v10  ;;  %v1522_v23 = vshrl.u32 %v360_v10, 16 }
  0x15   : > { %406 = vrot.lane.b32.xlu1 %v405_v15, %s1401_s15  ;;  %362 = vrot.lane.b32.xlu0 %v361_v16, %s1402_s16  ;;  %v398_v22 = vrot.slane %v1508_v17, 1  ;;  %v543_v24 = vrot.slane %v1511_v18, 1  ;;  %v1527_v27 = vshll.u32 %v360_v10, 16  ;;  %v520_v29 = vrot.slane %v1505_v14, 5 }
  0x16   : > { %v408_v25 = vrot.slane %v1514_v19, 5  ;;  %v409_v26 = vrot.slane %v1517_v20, 6  ;;  %v1532_v30 = vshrl.u32 %v1495_v11, 16  ;;  %v512_v32 = vrot.slane %v1522_v23, 6 }
  0x17   : > { %v1363_v28 = vpack.i.bf16 %v543_v24, %v398_v22  ;;  %v515_v33 = vrot.slane %v1527_v27, 7  ;;  %v1540_v35 = vshrl.u32 %v1499_v12, 16  ;;  %v539_v38 = vrot.slane %v532_v34, %v1483_v6 }
  0x18   : > { %v410_v31 = vor.u32 %v409_v26, %v408_v25  ;;  %v399_v36 = vor.u32 %v398_v22, %v1532_v30  ;;  %v553_v40 = vrot.slane %v1522_v23, 5  ;;  %v554_v41 = vrot.slane %v1527_v27, 6 }
  0x19   : > { %415 = vrot.lane.b32.xlu1 %v414_v21, %s1403_s17  ;;  %1364 = vrot.lane.b32.xlu0 %v1363_v28, %s1402_s16  ;;  %v516_v37 = vor.u32 %v515_v33, %v512_v32  ;;  %v544_v39 = vor.u32 %v543_v24, %v1540_v35  ;;  %v347_v42 = vrot.slane %v1514_v19, 6  ;;  %v350_v43 = vrot.slane %v1517_v20, 7 }
  0x1a   : > { %v540_v44 = vcombine.low %v539_v38, %v539_v38  ;;  %v375_v45 = vrot.slane %v1532_v30, 3  ;;  %v378_v46 = vrot.slane %v1508_v17, 4  ;;  %v731_v49 = vrot.slane %v1532_v30, 6 }
  0x1b   : > { %v1560_v48 = vor.u32 %v350_v43, %v347_v42  ;;  %v526_v51 = vrot.slane %v1540_v35, 3  ;;  %v529_v52 = vrot.slane %v1511_v18, 4  ;;  %v555_v53 = vor.u32 %v554_v41, %v553_v40 }
  0x1c   : > { %v1563_v50 = vor.u32 %v378_v46, %v375_v45  ;;  %v732_v54 = vrot.slane %v1508_v17, 7  ;;  %v550_v56 = vrot.slane %v1505_v14, 7  ;;  %v626_v58 = vrot.slane %v1540_v35, 6 }
  0x1d   : > { %521 = vrot.lane.b32.xlu1 %v520_v29, %s1402_s16  ;;  %411 = vrot.lane.b32.xlu0 %v410_v31, %s1401_s15  ;;  %v420_v55 = vsel %vm1556_vm2, %v1485_v7, %v1560_v48  ;;  %v1575_v57 = vor.u32 %v529_v52, %v526_v51  ;;  %v627_v59 = vrot.slane %v1511_v18, 7  ;;  %v559_v62 = vcombine.low %v1505_v14, %v1505_v14 }
  0x1e   : > { %v733_v60 = vor.u32 %v732_v54, %v731_v49  ;;  %v737_v0 = vrot.slane %v1499_v12, 5  ;;  %v740_v1 = vrot.slane %v1514_v19, 3  ;;  %v741_v2 = vrot.slane %v1517_v20, 4 }
  0x1f   : > { %v1584_v61 = vor.u32 %v627_v59, %v626_v58  ;;  %v630_v10 = vrot.slane %v1495_v11, 5  ;;  %v633_v14 = vrot.slane %v1522_v23, 3  ;;  %v634_v15 = vrot.slane %v1527_v27, 4 }
  0x20   : > { %v639_v16 = vcombine.low %v1501_v13, %v1501_v13  ;;  %v742_v21 = vor.u32 %v741_v2, %v740_v1  ;;  %v753_v22 = vrot.slane %v746_v4, %v1483_v6  ;;  %v650_v28 = vrot.slane %v1527_v27, 1 }
  0x21   : > { %402 = vrot.lane.b32.xlu1 %v399_v36, %s1402_s16  ;;  %517 = vrot.lane.b32.xlu0 %v516_v37, %s1402_s16  ;;  %v669_v63 = vsel %vm1556_vm2, %v1487_v8, %v1584_v61  ;;  %v635_v24 = vor.u32 %v634_v15, %v633_v14  ;;  %v757_v31 = vrot.slane %v1517_v20, 1  ;;  %v660_v36 = vrot.slane %v1540_v35, 5 }
  0x22   : > { %v646_v25 = vrot.slane %v639_v16, %v1483_v6  ;;  %v754_v26 = vcombine.low %v753_v22, %v753_v22  ;;  %v651_v32 = vor.u32 %v650_v28, %v1522_v23  ;;  %v661_v27 = vrot.slane %v1511_v18, 6 }
  0x23   : > { %v1368_v33 = vpack.i.bf16 %v757_v31, %v650_v28  ;;  %v758_v34 = vor.u32 %v757_v31, %v1514_v19  ;;  %v657_v37 = vrot.slane %v1495_v11, 7  ;;  %v764_v23 = vrot.slane %v1499_v12, 7 }
  0x24   : > { %v647_v29 = vcombine.low %v646_v25, %v646_v25  ;;  %v662_v20 = vor.u32 %v661_v27, %v660_v36  ;;  %v767_v38 = vrot.slane %v1532_v30, 5  ;;  %v666_v18 = vcombine.low %v1495_v11, %v1495_v11  ;;  %v842_v30 = vld [vmem:[%s1846_s2] sm:$0xff]  ;;  %v843_v11 = vld [vmem:[%s1846_s2 + $0x8] sm:$0x3] }
  0x25   : > { %547 = vrot.lane.b32.xlu1 %v544_v39, %s1402_s16  ;;  %541 = vrot.lane.b32.xlu0 %v540_v44, %s1402_s16  ;;  %v768_v39 = vrot.slane %v1508_v17, 6  ;;  %v1405_v35 = vmov 0   ;;  %v773_v17 = vcombine.low %v1499_v12, %v1499_v12  ;;  %v382_v40 = vcombine.low %v1489_v9, %v1489_v9 }
  0x26   : > { %1373 = vset.pattern.permute.xlu1 %v1405_v35  ;;  %1374 = vset.pattern.permute.xlu0 %v1405_v35 }
  0x27   : > { %v769_v19 = vor.u32 %v768_v39, %v767_v38  ;;  %v389_v41 = vrot.slane %v382_v40, %v1483_v6 }
  0x29   : > { %556 = vrot.lane.b32.xlu1 %v555_v53, %s1403_s17  ;;  %551 = vrot.lane.b32.xlu0 %v550_v56, %s1401_s15  ;;  %v397_v42 = vcombine.low %v389_v41, %v389_v41 }
  0x2d   : > { %734 = vrot.lane.b32.xlu1 %v733_v60, %s1402_s16  ;;  %560 = vrot.lane.b32.xlu0 %v559_v62, %s1403_s17 }
  0x31   : > { %738 = vrot.lane.b32.xlu1 %v737_v0, %s1402_s16  ;;  %631 = vrot.lane.b32.xlu0 %v630_v10, %s1402_s16 }
  0x35   : > { %743 = vrot.lane.b32.xlu1 %v742_v21, %s1401_s15  ;;  %636 = vrot.lane.b32.xlu0 %v635_v24, %s1401_s15  ;;  %v1693_v21 = vld [vmem:[%s1845_s1] sm:$0x1f]  }
  0x39   : > { %755 = vrot.lane.b32.xlu1 %v754_v26, %s1403_s17  ;;  %648 = vrot.lane.b32.xlu0 %v647_v29, %s1401_s15 }
  0x3d   : > { %654 = vrot.lane.b32.xlu1 %v651_v32, %s1403_s17  ;;  %1369 = vrot.lane.b32.xlu0 %v1368_v33, %s1403_s17 }
  0x41   : > { %761 = vrot.lane.b32.xlu1 %v758_v34, %s1403_s17  ;;  %658 = vrot.lane.b32.xlu0 %v657_v37, %s1401_s15 }
  0x45   : > { %663 = vrot.lane.b32.xlu1 %v662_v20, %s1401_s15  ;;  %765 = vrot.lane.b32.xlu0 %v764_v23, %s1401_s15 }
  0x49   : > { %667 = vrot.lane.b32.xlu1 %v666_v18, %s1403_s17  ;;  %770 = vrot.lane.b32.xlu0 %v769_v19, %s1403_s17 }
  0x4d   : > { %846 = vperm.xlu1 %1373, %v842_v30   ;;  %774 = vrot.lane.b32.xlu0 %v773_v17, %s1403_s17 }
  0x51   : > { %851 = vperm.xlu0 %1374, %v843_v11  }
  0x87   : > { %v407_v43 = vpop.permute.xlu1 %406  ;;  %v363_v44 = vpop.permute.xlu0 %362 }
  0x88   : > { %v424_v45 = vsel %vm421_vm6, %v420_v55, %v363_v44 }
  0x89   : > { %v429_v6 = vsel %vm1648_vm7, %v424_v45, %v1563_v50  ;;  %v1406_v50 = vmov 65535  }
  0x8a   : > { %v433_v46 = vsel %vm430_vm8, %v429_v6, %v397_v42  ;;  %v464_v55 = vsel %vm426_vm4, 4294967295, %v1406_v50 }
  0x8b   : > { %v416_v49 = vpop.permute.xlu1 %415  ;;  %v1365_v51 = vpop.permute.xlu0 %1364  ;;  %v1677_v62 = vsel %vm430_vm8, %v464_v55, 0 }
  0x8c   : > { %v1366_v53 = vunpack.i.l.bf16 %v1365_v51 }
  0x8e   : > { %v438_v7 = vsel %vm1662_vm11, %v433_v46, %v1366_v53 }
  0x8f   : > { %v522_v54 = vpop.permute.xlu1 %521  ;;  %v412_v48 = vpop.permute.xlu0 %411  ;;  %1287 = vmatpush3.bf16.msra.mxu0 %v438_v7 }
  0x90   : > { %1288 = vmatprep.subr.bf16.mxu0 %v1400_v5 }
  0x93   : > { %v403_v58 = vpop.permute.xlu1 %402  ;;  %v518_v60 = vpop.permute.xlu0 %517 }
  0x94   : > { %v442_v59 = vsel %vm439_vm13, %v403_v58, %v407_v43  ;;  %v562_v1 = vsel %vm1556_vm2, %v1501_v13, %v518_v60  ;;  %v1367_v13 = vunpack.i.h.bf16 %v1365_v51 }
  0x95   : > { %v447_v0 = vsel %vm1671_vm14, %v442_v59, %v412_v48  ;;  %v565_v2 = vsel %vm421_vm6, %v562_v1, %v522_v54 }
  0x96   : > { %v451_v4 = vsel %vm448_vm15, %v447_v0, %v416_v49  ;;  %v567_v14 = vsel %vm1648_vm7, %v565_v2, %v1575_v57 }
  0x97   : > { %v548_v10 = vpop.permute.xlu1 %547  ;;  %v466_v15 = vand.u32 %v1677_v62, %v451_v4  ;;  %v542_v16 = vpop.permute.xlu0 %541 }
  0x98   : > { %v570_v22 = vsel %vm430_vm8, %v567_v14, %v542_v16 }
  0x99   : > { %1289 = vmatpush3.bf16.msra.mxu0 %v466_v15  ;;  %v572_v57 = vsel %vm1662_vm11, %v570_v22, %v1367_v13 }
  0x9a   : > { %1294 = vmatprep.subr.bf16.mxu0 %v1400_v5 }
  0x9b   : > { %v557_v24 = vpop.permute.xlu1 %556  ;;  %v552_v25 = vpop.permute.xlu0 %551 }
  0x9c   : > { %1291 = vmatmul.mubr.msk.bf16.vlgmr.msra.gmra.mrb[0].mxu0 %vm459_vm1, %v1693_v21  ;;  %v575_v26 = vsel %vm439_vm13, %v548_v10, %v552_v25 }
  0x9d   : > { %1295 = vmatpush3.bf16.msra.mxu0 %v572_v57  ;;  %1298 = vmatprep.mubr.msk.bf16.mxu0 %vm1404_vm3, %v1400_v5  ;;  %v577_v29 = vsel %vm1671_vm14, %v575_v26, %v557_v24 }
  0x9e   : > { %1296 = vmatprep.subr.bf16.mxu0 %v1400_v5 }
  0x9f   : > { %v735_v28 = vpop.permute.xlu1 %734  ;;  %v561_v31 = vpop.permute.xlu0 %560 }
  0xa0   : > { %v580_v32 = vsel %vm448_vm15, %v577_v29, %v561_v31  ;;  %v776_v38 = vsel %vm1556_vm2, %v1489_v9, %v735_v28 }
  0xa1   : > { %v581_v33 = vand.u32 %v580_v32, %v1677_v62 }
  0xa3   : > { %v739_v34 = vpop.permute.xlu1 %738  ;;  %v632_v36 = vpop.permute.xlu0 %631  ;;  %1297 = vmatpush3.bf16.msra.mxu0 %v581_v33 }
  0xa4   : > { %1302 = vmatprep.subr.bf16.mxu0 %v1400_v5  ;;  %v779_v18 = vsel %vm421_vm6, %v776_v38, %v739_v34  ;;  %v672_v19 = vsel %vm421_vm6, %v669_v63, %v632_v36 }
  0xa6   : > { %1299 = vmatmul.mubr.msk.bf16.vlgmr.msra.gmra.mrb[4].mxu0 %vm459_vm1, %v1693_v21 }
  0xa7   : > { %v744_v27 = vpop.permute.xlu1 %743  ;;  %v637_v37 = vpop.permute.xlu0 %636  ;;  %1306 = vmatprep.mubr.msk.bf16.mxu0 %vm1404_vm3, %v1400_v5 }
  0xa8   : > { %v781_v30 = vsel %vm1648_vm7, %v779_v18, %v744_v27  ;;  %v674_v11 = vsel %vm1648_vm7, %v672_v19, %v637_v37  ;;  %vm896_vm7 = vcmask 1046528  }
  0xab   : > { %v756_v20 = vpop.permute.xlu1 %755  ;;  %v649_v23 = vpop.permute.xlu0 %648 }
  0xac   : > { %v784_v9 = vsel %vm430_vm8, %v781_v30, %v756_v20  ;;  %v677_v42 = vsel %vm430_vm8, %v674_v11, %v649_v23  ;;  %v912_v11 = vld [vmem:[%s1848_s4 + $0x8] sm:$0xff] }
  0xaf   : > { %v655_v39 = vpop.permute.xlu1 %654  ;;  %v1370_v17 = vpop.permute.xlu0 %1369 }
  0xb0   : > { %v1372_v40 = vunpack.i.h.bf16 %v1370_v17  ;;  %v1371_v41 = vunpack.i.l.bf16 %v1370_v17  ;;  %v911_v17 = vld [vmem:[%s1848_s4] sm:$0xff] }
  0xb2   : > { %v679_v47 = vsel %vm1662_vm11, %v677_v42, %v1371_v41  ;;  %v786_v8 = vsel %vm1662_vm11, %v784_v9, %v1372_v40 }
  0xb3   : > { %v762_v43 = vpop.permute.xlu1 %761  ;;  %v659_v61 = vpop.permute.xlu0 %658  ;;  %1303 = vmatpush3.bf16.msra.mxu0 %v679_v47  ;;  %1311 = vmatpush3.bf16.msra.mxu1 %v786_v8 }
  0xb4   : > { %1304 = vmatprep.subr.bf16.mxu0 %v1400_v5  ;;  %1312 = vmatprep.subr.bf16.mxu1 %v1400_v5  ;;  %v682_v44 = vsel %vm439_vm13, %v655_v39, %v659_v61 }
  0xb7   : > { %v664_v63 = vpop.permute.xlu1 %663  ;;  %v766_v12 = vpop.permute.xlu0 %765 }
  0xb8   : > { %v684_v45 = vsel %vm1671_vm14, %v682_v44, %v664_v63  ;;  %v789_v52 = vsel %vm439_vm13, %v762_v43, %v766_v12 }
  0xbb   : > { %v668_v6 = vpop.permute.xlu1 %667  ;;  %v771_v49 = vpop.permute.xlu0 %770 }
  0xbc   : > { %v687_v46 = vsel %vm448_vm15, %v684_v45, %v668_v6  ;;  %v791_v53 = vsel %vm1671_vm14, %v789_v52, %v771_v49  ;;  %v1380_v52 = vld [vmem:[%s1847_s3] sm:$0xff]   ;;  %vm1184_vm14 = vcmask 154624  }
  0xbd   : > { %v688_v51 = vand.u32 %v687_v46, %v1677_v62 }
  0xbf   : > { %1305 = vmatpush3.bf16.msra.mxu0 %v688_v51  ;;  %v775_v54 = vpop.permute.xlu0 %774 }
  0xc0   : > { %1318 = vmatprep.subr.bf16.mxu0 %v1400_v5  ;;  %v794_v7 = vsel %vm448_vm15, %v791_v53, %v775_v54 }
  0xc1   : > { %v795_v48 = vand.u32 %v794_v7, %v1677_v62 }
  0xc2   : > { %1307 = vmatmul.mubr.msk.bf16.vlgmr.msra.gmra.mrb[8].mxu0 %vm459_vm1, %v1693_v21 }
  0xc3   : > { %1330 = vmatprep.mubr.msk.bf16.mxu0 %vm1404_vm3, %v1400_v5  ;;  %1313 = vmatpush3.bf16.msra.mxu1 %v795_v48 }
  0xc4   : > { %1061 = vmatprep.subr.bf16.mxu1 %v1405_v35 }
  0xc6   : > { %1315 = vmatmul.mubr.msk.bf16.vlgmr.msra.gmra.mrb[0].mxu1 %vm459_vm1, %v1693_v21 }
  0xcc   : > { %v847_v25 = vpop.permute.xlu1 %846 }
  0xd0   : > { %v852_v28 = vpop.permute.xlu0 %851 }
 0x16f   : > { %v502_v50 = vpop.f32.mrb[0].mxu0 }
 0x170   : > { %v1292_v55 = vpop.f32.mrb[1].mxu0 }
 0x171   : > { %v505_v56 = vpop.f32.mrb[2].mxu0 }
 0x172   : > { %v1293_v58 = vpop.f32.mrb[3].mxu0 }
 0x179   : > { %v617_v59 = vpop.f32.mrb[4].mxu0 }
 0x17a   : > { %v624_v60 = vmax.f32 %v502_v50, %v617_v59  ;;  %v1300_v0 = vpop.f32.mrb[5].mxu0 }
 0x17b   : > { %v620_v62 = vpop.f32.mrb[6].mxu0 }
 0x17c   : > { %v625_v1 = vmax.f32 %v505_v56, %v620_v62  ;;  %v1301_v2 = vpop.f32.mrb[7].mxu0 }
 0x17d   : > { %v1013_v2 = vld [vmem:[%s1850_s6 + $0x8] sm:$0xff] }
 0x195   : > { %v724_v4 = vpop.f32.mrb[8].mxu0 }
 0x196   : > { %v1308_v10 = vpop.f32.mrb[9].mxu0 }
 0x197   : > { %v727_v14 = vpop.f32.mrb[10].mxu0  ;;  %v1381_v10 = vld [vmem:[%s1849_s5 + $0x4] ss:$8 sps:$4 sm:$0xff]  }
 0x198   : > { %v1309_v15 = vpop.f32.mrb[11].mxu0 }
 0x199   : > { %v831_v16 = vpop.f32.mrb[0].mxu1  ;;  %v1014_v15 = vld [vmem:[%s1850_s6 + $0x10] sm:$0xff] }
 0x19a   : > { %v838_v22 = vmax.f32 %v724_v4, %v831_v16  ;;  %v1316_v13 = vpop.f32.mrb[1].mxu1  ;;  %v1012_v4 = vld [vmem:[%s1850_s6] sm:$0xff] }
 0x19b   : > { %v834_v24 = vpop.f32.mrb[2].mxu1  ;;  %v1125_v16 = vld [vmem:[%s1852_s8] sm:$0xff] }
 0x19c   : > { %v839_v21 = vmax.f32 %v727_v14, %v834_v24  ;;  %v1317_v57 = vpop.f32.mrb[3].mxu1  ;;  %v840_v26 = vmax.f32 %v624_v60, %v838_v22  ;;  %v1015_v14 = vld [vmem:[%s1850_s6 + $0x18] sm:$0xff] }
 0x19e   : > { %v854_v29 = vadd.f32 %v847_v25, %v840_v26  ;;  %v841_v31 = vmax.f32 %v625_v1, %v839_v21 }
 0x1a0   : > { %v858_v32 = vmul.f32 0.25, %v854_v29  ;;  %v855_v33 = vadd.f32 %v852_v28, %v841_v31  ;;  %vm856_vm2 = vcmp.gt.f32.partialorder %v854_v29, 0.0  ;;  %v1384_v31 = vld [vmem:[%s1849_s5 + $0x14] ss:$8 sps:$4 sm:$0xff]  }
 0x1a2   : > { %vm857_vm5 = vcmp.gt.f32.partialorder %v855_v33, 0.0  ;;  %v859_v34 = vmul.f32 0.25, %v855_v33  ;;  %v860_v36 = vsel %vm856_vm2, %v854_v29, %v858_v32  ;;  %v1383_v29 = vld [vmem:[%s1849_s5] ss:$8 sps:$4 sm:$0xff]   ;;  %v1386_v32 = vld [vmem:[%s1849_s5 + $0x10] ss:$8 sps:$4 sm:$0xff]  }
 0x1a4   : > { %v861_v27 = vsel %vm857_vm5, %v855_v33, %v859_v34 }
 0x1a5   : > { %v862_v37 = vpack.c.bf16 %v861_v27, %v860_v36 }
 0x1a7   : > { %v872_v20 = vrot.slane %v862_v37, 1  ;;  %v866_v23 = vrot.slane %v862_v37, 3  ;;  %v878_v38 = vrot.slane %v862_v37, 7  ;;  %v869_v39 = vrot.slane %v862_v37, 6 }
 0x1a8   : > { %v884_v18 = vrot.slane %v862_v37, 5  ;;  %v875_v19 = vrot.slane %v862_v37, 4  ;;  %v881_v30 = vrot.slane %v862_v37, 2 }
 0x1a9   : > { %873 = vrot.lane.b32.xlu0 %v872_v20, %s1401_s15  ;;  %867 = vrot.lane.b32.xlu1 %v866_v23, %s1402_s16 }
 0x1ad   : > { %879 = vrot.lane.b32.xlu0 %v878_v38, %s1407_s24  ;;  %870 = vrot.lane.b32.xlu1 %v869_v39, %s1408_s25 }
 0x1b1   : > { %885 = vrot.lane.b32.xlu0 %v884_v18, %s1409_s26  ;;  %876 = vrot.lane.b32.xlu1 %v875_v19, %s1403_s17 }
 0x1b5   : > { %915 = vperm.xlu0 %1374, %v911_v17   ;;  %882 = vrot.lane.b32.xlu1 %v881_v30, %s1410_s29 }
 0x1b9   : > { %887 = vrot.lane.b32.xlu1 %v862_v37, %s1411_s12 }
 0x1bd   : > { %920 = vperm.xlu1 %1373, %v912_v11  }
 0x21b   : > { %v868_v40 = vpop.permute.xlu1 %867  ;;  %v874_v42 = vpop.permute.xlu0 %873 }
 0x21c   : > { %v891_v41 = vsel %vm426_vm4, %v862_v37, %v868_v40 }
 0x21d   : > { %1319 = vmatpush3.bf16.msra.mxu0 %v891_v41 }
 0x21e   : > { %1320 = vmatprep.subr.bf16.mxu0 %v1400_v5 }
 0x21f   : > { %v871_v9 = vpop.permute.xlu1 %870  ;;  %v880_v63 = vpop.permute.xlu0 %879 }
 0x220   : > { %v895_v43 = vsel %vm417_vm0, %v868_v40, %v871_v9  ;;  %vm928_vm0 = vcmask 736256  }
 0x221   : > { %v898_v47 = vsel %vm896_vm7, %v895_v43, %v874_v42 }
 0x222   : > { %1321 = vmatpush3.bf16.msra.mxu0 %v898_v47 }
 0x223   : > { %v877_v8 = vpop.permute.xlu1 %876  ;;  %1322 = vmatprep.subr.bf16.mxu0 %v1400_v5  ;;  %v886_v6 = vpop.permute.xlu0 %885 }
 0x224   : > { %v901_v61 = vsel %vm448_vm15, %v874_v42, %v877_v8  ;;  %v904_v12 = vsel %vm439_vm13, %v877_v8, %v880_v63  ;;  %vm1182_vm13 = vcmp.eq.s32.totalorder %v1472_v3, 0 }
 0x226   : > { %1323 = vmatpush3.bf16.msra.mxu0 %v901_v61 }
 0x227   : > { %v883_v44 = vpop.permute.xlu1 %882  ;;  %1324 = vmatprep.subr.bf16.mxu0 %v1400_v5 }
 0x228   : > { %v906_v45 = vsel %vm430_vm8, %v904_v12, %v883_v44  ;;  %v909_v46 = vsel %vm421_vm6, %v883_v44, %v886_v6 }
 0x22a   : > { %1325 = vmatpush3.bf16.msra.mxu0 %v906_v45  ;;  %v1124_v45 = vld [vmem:[%s1851_s7] sm:$0xf] }
 0x22b   : > { %1326 = vmatprep.subr.bf16.mxu0 %v1400_v5  ;;  %v888_v49 = vpop.permute.xlu1 %887 }
 0x22c   : > { %v933_v51 = vsel %vm426_vm4, %v888_v49, 0 }
 0x22e   : > { %1327 = vmatpush3.bf16.msra.mxu0 %v909_v46 }
 0x22f   : > { %1328 = vmatprep.subr.bf16.mxu0 %v1400_v5 }
 0x232   : > { %1329 = vmatpush3.bf16.msra.mxu0 %v933_v51 }
 0x233   : > { %1334 = vmatprep.subr.bf16.mxu0 %v1400_v5 }
 0x234   : > { %v916_v53 = vpop.permute.xlu0 %915 }
 0x235   : > { %1331 = vmatmul.mubr.msk.bf16.vlgmr.msra.gmra.mrb[12].mxu0 %vm928_vm0, %v1380_v52 }
 0x236   : > { %1338 = vmatprep.mubr.msk.bf16.mxu0 %vm1404_vm3, %v1400_v5  ;;  %vm1054_vm3 = vcmask 130048  }
 0x237   : > { %1258 = vmatprep.mubr.msk.bf16.mxu1 %vm1054_vm3, %v1381_v10 }
 0x23c   : > { %v921_v50 = vpop.permute.xlu1 %920 }
 0x308   : > { %v969_v54 = vpop.f32.mrb[12].mxu0 }
 0x309   : > { %v970_v7 = vadd.f32 %v969_v54, %v916_v53  ;;  %v1332_v48 = vpop.f32.mrb[13].mxu0 }
 0x30a   : > { %v972_v55 = vpop.f32.mrb[14].mxu0 }
 0x30b   : > { %v978_v56 = vmul.f32 0.25, %v970_v7  ;;  %v973_v58 = vadd.f32 %v972_v55, %v921_v50  ;;  %v1333_v59 = vpop.f32.mrb[15].mxu0  ;;  %vm976_vm4 = vcmp.gt.f32.partialorder %v970_v7, 0.0 }
 0x30d   : > { %vm977_vm6 = vcmp.gt.f32.partialorder %v973_v58, 0.0  ;;  %v979_v60 = vmul.f32 0.25, %v973_v58  ;;  %v980_v0 = vsel %vm976_vm4, %v970_v7, %v978_v56 }
 0x30f   : > { %v981_v62 = vsel %vm977_vm6, %v973_v58, %v979_v60 }
 0x310   : > { %v982_v1 = vpack.c.bf16 %v981_v62, %v980_v0 }
 0x312   : > { %991 = vrot.lane.b32.xlu1 %v982_v1, %s1408_s25  ;;  %988 = vrot.lane.b32.xlu0 %v982_v1, %s1402_s16 }
 0x313   : > { %1062 = vmatpush1.bf16.msra.mxu1 %v982_v1 }
 0x314   : > { %1063 = vmatprep.subr.bf16.mxu1 %v1405_v35 }
 0x316   : > { %997 = vrot.lane.b32.xlu1 %v982_v1, %s1403_s17  ;;  %994 = vrot.lane.b32.xlu0 %v982_v1, %s1401_s15 }
 0x31a   : > { %1003 = vrot.lane.b32.xlu1 %v982_v1, %s1410_s29  ;;  %1000 = vrot.lane.b32.xlu0 %v982_v1, %s1407_s24 }
 0x31e   : > { %1009 = vrot.lane.b32.xlu1 %v982_v1, %s1411_s12  ;;  %1006 = vrot.lane.b32.xlu0 %v982_v1, %s1409_s26 }
 0x322   : > { %1023 = vperm.xlu1 %1373, %v1013_v2   ;;  %1018 = vperm.xlu0 %1374, %v1012_v4  }
 0x326   : > { %1033 = vperm.xlu1 %1373, %v1015_v14   ;;  %1028 = vperm.xlu0 %1374, %v1014_v15  }
 0x32a   : > { %1128 = vperm.xlu0 %1374, %v1125_v16  }
 0x384   : > { %v989_v22 = vpop.permute.xlu0 %988  ;;  %v992_v13 = vpop.permute.xlu1 %991 }
 0x385   : > { %1064 = vmatpush1.bf16.msra.mxu1 %v989_v22 }
 0x386   : > { %1065 = vmatprep.subr.bf16.mxu1 %v1405_v35 }
 0x388   : > { %v995_v24 = vpop.permute.xlu0 %994  ;;  %v998_v25 = vpop.permute.xlu1 %997 }
 0x389   : > { %1066 = vmatpush1.bf16.msra.mxu1 %v992_v13 }
 0x38a   : > { %1067 = vmatprep.subr.bf16.mxu1 %v1405_v35 }
 0x38c   : > { %v1001_v21 = vpop.permute.xlu0 %1000  ;;  %v1004_v57 = vpop.permute.xlu1 %1003 }
 0x38d   : > { %1068 = vmatpush1.bf16.msra.mxu1 %v995_v24 }
 0x38e   : > { %1069 = vmatprep.subr.bf16.mxu1 %v1405_v35 }
 0x390   : > { %v1007_v26 = vpop.permute.xlu0 %1006  ;;  %v1010_v28 = vpop.permute.xlu1 %1009 }
 0x391   : > { %1070 = vmatpush1.bf16.msra.mxu1 %v998_v25 }
 0x392   : > { %1071 = vmatprep.subr.bf16.mxu1 %v1405_v35 }
 0x395   : > { %1072 = vmatpush1.bf16.msra.mxu1 %v1001_v21 }
 0x396   : > { %1073 = vmatprep.subr.bf16.mxu1 %v1405_v35 }
 0x399   : > { %1074 = vmatpush1.bf16.msra.mxu1 %v1004_v57 }
 0x39a   : > { %1075 = vmatprep.subr.bf16.mxu1 %v1405_v35 }
 0x39d   : > { %1076 = vmatpush1.bf16.msra.mxu1 %v1007_v26 }
 0x39e   : > { %1077 = vmatprep.subr.bf16.mxu1 %v1405_v35 }
 0x3a1   : > { %1078 = vmatpush1.bf16.msra.mxu1 %v1010_v28  ;;  %v1019_v33 = vpop.permute.xlu0 %1018  ;;  %v1024_v27 = vpop.permute.xlu1 %1023 }
 0x3a4   : > { %1094 = vmatmul.mubr.bf16.vlgmr.msra.gmra.mrb[4].mxu1 %v1383_v29 }
 0x3a5   : > { %1259 = vmatprep.mubr.msk.bf16.mxu1 %vm1054_vm3, %v1384_v31  ;;  %v1029_v17 = vpop.permute.xlu0 %1028  ;;  %v1034_v9 = vpop.permute.xlu1 %1033 }
 0x3a9   : > { %v1129_v6 = vpop.permute.xlu0 %1128 }
 0x3ac   : > { %1102 = vmatmul.mubr.bf16.gmra.mrb[8].mxu1 %v1386_v32 }
 0x477   : > { %v1095_v35 = vpop.f32.mrb[4].mxu1 }
 0x478   : > { %v1096_v34 = vadd.f32 %v1095_v35, %v1019_v33  ;;  %v1097_v36 = vpop.f32.mrb[5].mxu1 }
 0x479   : > { %v1098_v37 = vpop.f32.mrb[6].mxu1 }
 0x47a   : > { %v1114_v20 = vmul.f32 0.25, %v1096_v34  ;;  %v1099_v23 = vadd.f32 %v1098_v37, %v1024_v27  ;;  %v1100_v38 = vpop.f32.mrb[7].mxu1  ;;  %vm1110_vm8 = vcmp.gt.f32.partialorder %v1096_v34, 0.0 }
 0x47c   : > { %vm1111_vm9 = vcmp.gt.f32.partialorder %v1099_v23, 0.0  ;;  %v1115_v39 = vmul.f32 0.25, %v1099_v23  ;;  %v1118_v18 = vsel %vm1110_vm8, %v1096_v34, %v1114_v20 }
 0x47e   : > { %v1119_v19 = vsel %vm1111_vm9, %v1099_v23, %v1115_v39 }
 0x47f   : > { %v1122_v30 = vpack.c.bf16 %v1119_v19, %v1118_v18  ;;  %v1103_v11 = vpop.f32.mrb[8].mxu1 }
 0x480   : > { %v1104_v40 = vadd.f32 %v1103_v11, %v1029_v17  ;;  %v1105_v41 = vpop.f32.mrb[9].mxu1 }
 0x481   : > { %v1106_v42 = vpop.f32.mrb[10].mxu1  ;;  %1335 = vmatpush3.bf16.msra.mxu0 %v1122_v30 }
 0x482   : > { %v1116_v43 = vmul.f32 0.25, %v1104_v40  ;;  %v1107_v47 = vadd.f32 %v1106_v42, %v1034_v9  ;;  %v1108_v8 = vpop.f32.mrb[11].mxu1  ;;  %1336 = vmatprep.subr.bf16.mxu0 %v1400_v5  ;;  %vm1112_vm10 = vcmp.gt.f32.partialorder %v1104_v40, 0.0 }
 0x484   : > { %vm1113_vm11 = vcmp.gt.f32.partialorder %v1107_v47, 0.0  ;;  %v1117_v61 = vmul.f32 0.25, %v1107_v47  ;;  %v1120_v63 = vsel %vm1112_vm10, %v1104_v40, %v1116_v43 }
 0x486   : > { %v1121_v12 = vsel %vm1113_vm11, %v1107_v47, %v1117_v61 }
 0x487   : > { %v1123_v44 = vpack.c.bf16 %v1121_v12, %v1120_v63 }
 0x489   : > { %1337 = vmatpush3.bf16.msra.mxu0 %v1123_v44 }
 0x48c   : > { %1339 = vmatmul.mubr.msk.bf16.vlgmr.msra.gmra.mrb[16].mxu0 %vm1131_vm12, %v1124_v45 }
 0x55f   : > { %v1169_v46 = vpop.f32.mrb[16].mxu0 }
 0x560   : > { %v1170_v49 = vadd.f32 %v1169_v46, %v1129_v6  ;;  %v1340_v51 = vpop.f32.mrb[17].mxu0 }
 0x561   : > { %v1172_v52 = vpop.f32.mrb[18].mxu0 }
 0x562   : > { %v1177_v5 = vsub.f32 0.0, %v1170_v49  ;;  %v1341_v53 = vpop.f32.mrb[19].mxu0 }
 0x564   : > { %v1178_v54 = vmul.f32 1.442695, %v1177_v5 }
 0x566   : > { %1387 = vpow2.f32 %v1178_v54 }
 0x570   : > { %v1388_v7 = vpop.eup %1387 }
 0x571   : > { %v1180_v48 = vadd.f32 1.0, %v1388_v7 }
 0x573   : > { %1389 = vrcp.f32 %v1180_v48 }
 0x57d   : > { %v1390_v50 = vpop.eup %1389 }
 0x57e   : > { %v1183_v55 = vsel %vm1182_vm13, %v1390_v50, %v1170_v49 }
 0x57f   : > { %1185 = vst.msk [vmem:[%s330_s23] sm:$0xff] %vm1184_vm14, %v1183_v55 }
 0x580 PF: > { %s19_s30 = sadd.s32 1, %s1397_s30  }
 0x581   : > { %p16_p4 = scmp.ge.s32.totalorder %s19_s30, 4  }
 0x583   :  { %18 = sbr.rel (!%p16_p4) target bundleno = 1 (0x1), region = 86 }

</bundles_post_ra>
